<compile_context>
chip_gen: v7x
topology: tpu7x:2x2x1
jax: 0.10.0
libtpu: 0.0.40
codegen_flags: <defaults>
</compile_context>

<pallas_src>
import jax
import jax.numpy as jnp
from jax.experimental import pallas as pl
from jax.experimental.pallas import tpu as pltpu

# Model hyperparameters (small, synthetic).
THOUGHT_SIZE = 32
WORD_SIZE = 32
VOCAB_SIZE = 64
MAXLEN = 8
BATCH = 4
HIDDEN = WORD_SIZE                      # LSTM hidden size
INPUT_SIZE = THOUGHT_SIZE + WORD_SIZE   # LSTM input size

H = HIDDEN
H4 = 4 * H                              # 128 (gate width, PyTorch order i,f,g,o)
BM = BATCH - 1                          # 3  per-direction batch
BP = 8                                  # 2*BM padded to one full sublane group
K = 128                                 # lane width of the packed slabs

# Row offsets inside the packed weight slab (all multiples of 8).
_WX_OFF = 0                             # (K, 4H)  [Wx_p ; Wx_n ; 0]
_WTH_OFF = _WX_OFF + K                  # (K, 4H)  [Wth_p ; Wth_n ; b_p ; b_n ; 0]
_WHH_P_OFF = _WTH_OFF + K               # (H, 4H)
_WHH_N_OFF = _WHH_P_OFF + H             # (H, 4H)
_WO_OFF = _WHH_N_OFF + H                # (H, 128) worder^T, cols >= V are 0
_BO_OFF = _WO_OFF + H                   # (8, 128) row 0 = worder bias
_W_ROWS = _BO_OFF + 8                   # 360


def duo_decoder_kernel(acts_ref, w_ref, out_ref):
    """Fused two-direction LSTM recurrence + shared vocab projection.

    acts_ref : (T*BP + BP, 128)  rows 0..T*BP-1 : per-step block-diagonal
                                 delayed word embeddings (prev | next),
                                 rows T*BP..     : block-diagonal thoughts +
                                 one-hot bias-selector columns.
    w_ref    : (360, 128)        packed weights (see offsets above).
    out_ref  : (2*Bm, T*V)       rows 0..Bm-1 = prev, Bm..2Bm-1 = next;
                                 columns t*V:(t+1)*V = step-t logits.
    """
    V = VOCAB_SIZE
    two_bm = out_ref.shape[0]
    bm = two_bm // 2
    T = out_ref.shape[1] // V
    XA = T * BP                          # 64 packed per-step input rows

    # ---- Off-critical-path precompute (one MXU pass each) -----------------
    # x-side gates for every step and both directions at once.
    xg_all = jnp.dot(acts_ref[0:XA, :], w_ref[_WX_OFF:_WX_OFF + K, :],
                     preferred_element_type=jnp.float32)            # (64, 128)
    # Time-invariant thought contribution; bias folded in via one-hot columns.
    tg = jnp.dot(acts_ref[XA:XA + BP, :], w_ref[_WTH_OFF:_WTH_OFF + K, :],
                 preferred_element_type=jnp.float32)                # (8, 128)

    # Recurrent weights of both directions, column-concatenated once.
    whh = jnp.concatenate([w_ref[_WHH_P_OFF:_WHH_P_OFF + H, :],
                           w_ref[_WHH_N_OFF:_WHH_N_OFF + H, :]],
                          axis=1)                                    # (32, 256)
    wo = w_ref[_WO_OFF:_WO_OFF + H, :]                               # (32, 128)
    bo_row = w_ref[_BO_OFF:_BO_OFF + 1, :]                           # (1, 128)
    bo = bo_row[:, 0:V]                                              # (1, 64)

    # Row mask: rows < bm belong to the prev direction.
    row_ids = jax.lax.broadcasted_iota(jnp.int32, (BP, H4), 0)
    is_prev = row_ids < bm

    # ---- Serial recurrence (fully unrolled, h/c live in vregs) ------------
    h = jnp.zeros((BP, H), jnp.float32)
    c = jnp.zeros((BP, H), jnp.float32)
    hs = []
    for t in range(T):
        # Loop-invariant w.r.t. h -> scheduled off the serial chain.
        gx = xg_all[t * BP:(t + 1) * BP, :] + tg                     # (8, 128)
        if t == 0:
            gates = gx                     # h == 0 and delayed embedding == 0
        else:
            rec2 = jnp.dot(h, whh, preferred_element_type=jnp.float32)  # (8,256)
            rec = jnp.where(is_prev, rec2[:, 0:H4], rec2[:, H4:2 * H4])
            gates = gx + rec
        # One sigmoid pass + one tanh pass per step on a single (8,128) vreg.
        sg = jax.nn.sigmoid(gates)
        tg_act = jnp.tanh(gates)
        i = sg[:, 0:H]
        f = sg[:, H:2 * H]
        g = tg_act[:, 2 * H:3 * H]
        o = sg[:, 3 * H:4 * H]
        c = f * c + i * g
        h = o * jnp.tanh(c)
        hs.append(h)

    # ---- Shared worder projection, entirely after the recurrence ----------
    # Same RHS for every push -> fully pipelined, off the critical chain.
    blocks = [jnp.dot(hh, wo, preferred_element_type=jnp.float32)[:, 0:V] + bo
              for hh in hs]                                          # 8 x (8, 64)
    out = jnp.concatenate(blocks, axis=1)                            # (8, 512)
    out_ref[...] = out[0:two_bm, :]


def _split_lstm(lstm_p):
    """Split PyTorch-layout LSTM weights for the kernel."""
    wih = lstm_p["w_ih"]                        # (4H, TH+WS)
    wth = wih[:, :THOUGHT_SIZE].T               # (TH, 4H) thought part
    wx = wih[:, THOUGHT_SIZE:].T                # (WS, 4H) word part
    whh = lstm_p["w_hh"].T                      # (H, 4H)
    b = lstm_p["b_ih"] + lstm_p["b_hh"]         # (4H,)
    return wth, wx, whh, b


def pack_weights(params):
    """Pack every weight/bias into one (360, 128) f32 slab (single DMA)."""
    TH, WS, V = THOUGHT_SIZE, WORD_SIZE, VOCAB_SIZE
    wth_p, wx_p, whh_p, b_p = _split_lstm(params["prev_lstm"])
    wth_n, wx_n, whh_n, b_n = _split_lstm(params["next_lstm"])
    wo_t = params["worder"]["w"].T              # (H, V)
    bo = params["worder"]["b"]                  # (V,)

    wx_pad = (jnp.zeros((K, H4), jnp.float32)
              .at[0:WS].set(wx_p)
              .at[WS:2 * WS].set(wx_n))
    wth_pad = (jnp.zeros((K, H4), jnp.float32)
               .at[0:TH].set(wth_p)
               .at[TH:2 * TH].set(wth_n)
               .at[2 * TH].set(b_p)
               .at[2 * TH + 1].set(b_n))
    wo_pad = jnp.zeros((H, K), jnp.float32).at[:, 0:V].set(wo_t)
    bo_pad = jnp.zeros((8, K), jnp.float32).at[0, 0:V].set(bo)
    return jnp.concatenate([wx_pad, wth_pad, whh_p, whh_n, wo_pad, bo_pad],
                           axis=0)              # (360, 128)


def pack_acts(thoughts, word_embeddings):
    """Pack thoughts + delayed word embeddings into one (72, 128) f32 slab."""
    TH, WS = THOUGHT_SIZE, WORD_SIZE
    B = thoughts.shape[0]
    T = word_embeddings.shape[0]
    bm = B - 1

    we_prev = word_embeddings[:, 0:bm, :]                    # (T, Bm, WS)
    we_next = word_embeddings[:, 1:B, :]
    d_prev = jnp.concatenate([jnp.zeros_like(we_prev[:1]), we_prev[:-1]], 0)
    d_next = jnp.concatenate([jnp.zeros_like(we_next[:1]), we_next[:-1]], 0)

    # Per-step block-diagonal layout: cols 0..WS-1 = prev word input,
    # WS..2WS-1 = next word input; padding rows/cols stay zero.
    x_aug = jnp.zeros((T, BP, K), jnp.float32)
    x_aug = x_aug.at[:, 0:bm, 0:WS].set(d_prev)
    x_aug = x_aug.at[:, bm:2 * bm, WS:2 * WS].set(d_next)
    x_aug = x_aug.reshape(T * BP, K)

    # Block-diagonal thoughts + one-hot columns selecting the per-direction bias.
    th_aug = jnp.zeros((BP, K), jnp.float32)
    th_aug = th_aug.at[0:bm, 0:TH].set(thoughts[1:B])        # prev sees thoughts[1:]
    th_aug = th_aug.at[bm:2 * bm, TH:2 * TH].set(thoughts[0:bm])  # next: thoughts[:-1]
    th_aug = th_aug.at[0:bm, 2 * TH].set(1.0)                # selects b_p
    th_aug = th_aug.at[bm:2 * bm, 2 * TH + 1].set(1.0)       # selects b_n
    return jnp.concatenate([x_aug, th_aug], axis=0)          # (72, 128)


@jax.jit
def duo_decoder_forward(params, thoughts, word_embeddings):
    """thoughts: (B, THOUGHT_SIZE); word_embeddings: (MAXLEN, B, WORD_SIZE)."""
    T = word_embeddings.shape[0]
    V = VOCAB_SIZE
    bm = thoughts.shape[0] - 1

    # Weight packing is parameter prep (cacheable across calls); acts packing
    # is pure layout plumbing on tiny arrays.
    w_slab = pack_weights(params)                            # (360, 128)
    acts = pack_acts(thoughts, word_embeddings)              # (72, 128)

    out = pl.pallas_call(
        duo_decoder_kernel,
        out_shape=jax.ShapeDtypeStruct((2 * bm, T * V), jnp.float32),
        in_specs=[pl.BlockSpec(memory_space=pltpu.MemorySpace.VMEM),
                  pl.BlockSpec(memory_space=pltpu.MemorySpace.VMEM)],
        out_specs=pl.BlockSpec(memory_space=pltpu.MemorySpace.VMEM),
    )(acts, w_slab)

    # Pure row-major reshape (zero copy): (2*Bm, T*V) -> (2, Bm, T, V).
    out = out.reshape(2, bm, T, V)
    return out[0], out[1]


def init_params(key):
    """Deterministic init mirroring PyTorch default uniform bounds."""
    ks = jax.random.split(key, 10)
    bound = 1.0 / jnp.sqrt(H)

    def u(k, shape):
        return jax.random.uniform(k, shape, jnp.float32, -bound, bound)

    return {
        "prev_lstm": {
            "w_ih": u(ks[0], (4 * H, INPUT_SIZE)),
            "w_hh": u(ks[1], (4 * H, H)),
            "b_ih": u(ks[2], (4 * H,)),
            "b_hh": u(ks[3], (4 * H,)),
        },
        "next_lstm": {
            "w_ih": u(ks[4], (4 * H, INPUT_SIZE)),
            "w_hh": u(ks[5], (4 * H, H)),
            "b_ih": u(ks[6], (4 * H,)),
            "b_hh": u(ks[7], (4 * H,)),
        },
        "worder": {
            "w": u(ks[8], (VOCAB_SIZE, H)),
            "b": u(ks[9], (VOCAB_SIZE,)),
        },
    }


def _ref_args(lstm_p, worder_p):
    wih_t = lstm_p["w_ih"].T                        # (IN, 4H)
    whh_t = lstm_p["w_hh"].T                        # (H, 4H)
    b = (lstm_p["b_ih"] + lstm_p["b_hh"])[None, :]  # (1, 4H)
    wo_t = worder_p["w"].T                          # (H, V)
    bo = worder_p["b"][None, :]                     # (1, V)
    return wih_t, whh_t, b, wo_t, bo


def ref_lstm_worder(x, wih_t, whh_t, b, wo_t, bo):
    """Pure-JAX reference for the fused LSTM + Linear (lax.scan)."""
    hh = whh_t.shape[0]
    bm = x.shape[1]

    def step(carry, x_t):
        h, c = carry
        gates = x_t @ wih_t + h @ whh_t + b
        i = jax.nn.sigmoid(gates[:, :hh])
        f = jax.nn.sigmoid(gates[:, hh:2 * hh])
        g = jnp.tanh(gates[:, 2 * hh:3 * hh])
        o = jax.nn.sigmoid(gates[:, 3 * hh:])
        c = f * c + i * g
        h = o * jnp.tanh(c)
        return (h, c), h @ wo_t + bo

    init = (jnp.zeros((bm, hh), jnp.float32), jnp.zeros((bm, hh), jnp.float32))
    _, out = jax.lax.scan(step, init, x)
    return out


if __name__ == "__main__":
    key = jax.random.PRNGKey(0)
    k_th, k_we, k_p = jax.random.split(key, 3)

    thoughts = jax.random.normal(k_th, (BATCH, THOUGHT_SIZE), jnp.float32)
    word_embeddings = jax.random.normal(
        k_we, (MAXLEN, BATCH, WORD_SIZE), jnp.float32)

    params = init_params(k_p)

    prev_pred, next_pred = duo_decoder_forward(params, thoughts,
                                               word_embeddings)
    jax.block_until_ready((prev_pred, next_pred))

    assert prev_pred.shape == (BATCH - 1, MAXLEN, VOCAB_SIZE)
    assert next_pred.shape == (BATCH - 1, MAXLEN, VOCAB_SIZE)

    # Correctness check against a pure-JAX reference (mirrors the PyTorch
    # module's explicit x construction).
    thoughts_rep = jnp.broadcast_to(thoughts[None],
                                    (MAXLEN, BATCH, THOUGHT_SIZE))
    prev_we = word_embeddings[:, :-1, :]
    next_we = word_embeddings[:, 1:, :]
    delayed_prev_we = jnp.concatenate(
        [jnp.zeros_like(prev_we[-1:]), prev_we[:-1]], axis=0)
    delayed_next_we = jnp.concatenate(
        [jnp.zeros_like(next_we[-1:]), next_we[:-1]], axis=0)
    x_prev = jnp.concatenate([thoughts_rep[:, 1:, :], delayed_prev_we], axis=2)
    x_next = jnp.concatenate([thoughts_rep[:, :-1, :], delayed_next_we],
                             axis=2)

    ref_prev = jnp.transpose(
        ref_lstm_worder(x_prev, *_ref_args(params["prev_lstm"],
                                           params["worder"])), (1, 0, 2))
    ref_next = jnp.transpose(
        ref_lstm_worder(x_next, *_ref_args(params["next_lstm"],
                                           params["worder"])), (1, 0, 2))

    assert jnp.allclose(prev_pred, ref_prev, atol=1e-4, rtol=1e-4)
    assert jnp.allclose(next_pred, ref_next, atol=1e-4, rtol=1e-4)

    print("KERNEL_OK")
</pallas_src>

<mosaic_0001>
module attributes {stable_mosaic.version = 11 : i64} {
  func.func @duo_decoder_kernel(%arg0: memref<72x128xf32, #tpu.memory_space<vmem>>, %arg1: memref<360x128xf32, #tpu.memory_space<vmem>>, %arg2: memref<6x512xf32, #tpu.memory_space<vmem>>) attributes {dimension_semantics = [], scalar_prefetch = 0 : i64, scratch_operands = 0 : i64, tpu.core_type = #tpu.core_type<tc>} {
    %c0 = arith.constant 0 : index
    %c0_0 = arith.constant 0 : index
    %0 = vector.load %arg0[%c0, %c0_0] : memref<72x128xf32, #tpu.memory_space<vmem>>, vector<64x128xf32>
    %c0_1 = arith.constant 0 : index
    %c0_2 = arith.constant 0 : index
    %1 = vector.load %arg1[%c0_1, %c0_2] : memref<360x128xf32, #tpu.memory_space<vmem>>, vector<128x128xf32>
    %cst = arith.constant dense<0.000000e+00> : vector<64x128xf32>
    %2 = tpu.matmul %0, %1, %cst {dimension_numbers = #tpu.dot_dimension_numbers<[1], [0], [0], [1], [0, 0, 1, 1], [], []>} : vector<64x128xf32>, vector<128x128xf32>, vector<64x128xf32> -> vector<64x128xf32>
    %c64 = arith.constant 64 : index
    %c0_3 = arith.constant 0 : index
    %3 = vector.load %arg0[%c64, %c0_3] : memref<72x128xf32, #tpu.memory_space<vmem>>, vector<8x128xf32>
    %c128 = arith.constant 128 : index
    %c0_4 = arith.constant 0 : index
    %4 = vector.load %arg1[%c128, %c0_4] : memref<360x128xf32, #tpu.memory_space<vmem>>, vector<128x128xf32>
    %cst_5 = arith.constant dense<0.000000e+00> : vector<8x128xf32>
    %5 = tpu.matmul %3, %4, %cst_5 {dimension_numbers = #tpu.dot_dimension_numbers<[1], [0], [0], [1], [0, 0, 1, 1], [], []>} : vector<8x128xf32>, vector<128x128xf32>, vector<8x128xf32> -> vector<8x128xf32>
    %c256 = arith.constant 256 : index
    %c0_6 = arith.constant 0 : index
    %6 = vector.load %arg1[%c256, %c0_6] : memref<360x128xf32, #tpu.memory_space<vmem>>, vector<32x128xf32>
    %c288 = arith.constant 288 : index
    %c0_7 = arith.constant 0 : index
    %7 = vector.load %arg1[%c288, %c0_7] : memref<360x128xf32, #tpu.memory_space<vmem>>, vector<32x128xf32>
    %8 = tpu.concatenate %6, %7 in 1 : vector<32x128xf32>, vector<32x128xf32> -> vector<32x256xf32>
    %c320 = arith.constant 320 : index
    %c0_8 = arith.constant 0 : index
    %9 = vector.load %arg1[%c320, %c0_8] : memref<360x128xf32, #tpu.memory_space<vmem>>, vector<32x128xf32>
    %c352 = arith.constant 352 : index
    %c0_9 = arith.constant 0 : index
    %10 = vector.load %arg1[%c352, %c0_9] : memref<360x128xf32, #tpu.memory_space<vmem>>, vector<1x128xf32>
    %11 = vector.extract_strided_slice %10 {offsets = [0, 0], sizes = [1, 64], strides = [1, 1]} : vector<1x128xf32> to vector<1x64xf32>
    %12 = tpu.iota {dimensions = array<i32: 0>} : vector<8x128xi32>
    %c3_i32 = arith.constant 3 : i32
    %13 = vector.broadcast %c3_i32 : i32 to vector<8x128xi32>
    %14 = arith.cmpi slt, %12, %13 : vector<8x128xi32>
    %cst_10 = arith.constant 0.000000e+00 : f32
    %15 = vector.broadcast %cst_10 : f32 to vector<8x32xf32>
    %16 = vector.extract_strided_slice %2 {offsets = [0, 0], sizes = [8, 128], strides = [1, 1]} : vector<64x128xf32> to vector<8x128xf32>
    %17 = arith.addf %16, %5 : vector<8x128xf32>
    %18 = arith.negf %17 : vector<8x128xf32>
    %19 = math.exp %18 : vector<8x128xf32>
    %cst_11 = arith.constant 1.000000e+00 : f32
    %20 = vector.broadcast %cst_11 : f32 to vector<8x128xf32>
    %21 = arith.addf %20, %19 : vector<8x128xf32>
    %22 = arith.divf %20, %21 : vector<8x128xf32>
    %23 = math.tanh %17 : vector<8x128xf32>
    %24 = vector.extract_strided_slice %22 {offsets = [0, 0], sizes = [8, 32], strides = [1, 1]} : vector<8x128xf32> to vector<8x32xf32>
    %25 = vector.extract_strided_slice %22 {offsets = [0, 32], sizes = [8, 32], strides = [1, 1]} : vector<8x128xf32> to vector<8x32xf32>
    %26 = vector.extract_strided_slice %23 {offsets = [0, 64], sizes = [8, 32], strides = [1, 1]} : vector<8x128xf32> to vector<8x32xf32>
    %27 = vector.extract_strided_slice %22 {offsets = [0, 96], sizes = [8, 32], strides = [1, 1]} : vector<8x128xf32> to vector<8x32xf32>
    %28 = arith.mulf %25, %15 : vector<8x32xf32>
    %29 = arith.mulf %24, %26 : vector<8x32xf32>
    %30 = arith.addf %28, %29 : vector<8x32xf32>
    %31 = math.tanh %30 : vector<8x32xf32>
    %32 = arith.mulf %27, %31 : vector<8x32xf32>
    %33 = vector.extract_strided_slice %2 {offsets = [8, 0], sizes = [8, 128], strides = [1, 1]} : vector<64x128xf32> to vector<8x128xf32>
    %34 = arith.addf %33, %5 : vector<8x128xf32>
    %cst_12 = arith.constant dense<0.000000e+00> : vector<8x256xf32>
    %35 = tpu.matmul %32, %8, %cst_12 {dimension_numbers = #tpu.dot_dimension_numbers<[1], [0], [0], [1], [0, 0, 1, 1], [], []>} : vector<8x32xf32>, vector<32x256xf32>, vector<8x256xf32> -> vector<8x256xf32>
    %36 = vector.extract_strided_slice %35 {offsets = [0, 0], sizes = [8, 128], strides = [1, 1]} : vector<8x256xf32> to vector<8x128xf32>
    %37 = vector.extract_strided_slice %35 {offsets = [0, 128], sizes = [8, 128], strides = [1, 1]} : vector<8x256xf32> to vector<8x128xf32>
    %38 = arith.select %14, %36, %37 : vector<8x128xi1>, vector<8x128xf32>
    %39 = arith.addf %34, %38 : vector<8x128xf32>
    %40 = arith.negf %39 : vector<8x128xf32>
    %41 = math.exp %40 : vector<8x128xf32>
    %cst_13 = arith.constant 1.000000e+00 : f32
    %42 = vector.broadcast %cst_13 : f32 to vector<8x128xf32>
    %43 = arith.addf %42, %41 : vector<8x128xf32>
    %44 = arith.divf %42, %43 : vector<8x128xf32>
    %45 = math.tanh %39 : vector<8x128xf32>
    %46 = vector.extract_strided_slice %44 {offsets = [0, 0], sizes = [8, 32], strides = [1, 1]} : vector<8x128xf32> to vector<8x32xf32>
    %47 = vector.extract_strided_slice %44 {offsets = [0, 32], sizes = [8, 32], strides = [1, 1]} : vector<8x128xf32> to vector<8x32xf32>
    %48 = vector.extract_strided_slice %45 {offsets = [0, 64], sizes = [8, 32], strides = [1, 1]} : vector<8x128xf32> to vector<8x32xf32>
    %49 = vector.extract_strided_slice %44 {offsets = [0, 96], sizes = [8, 32], strides = [1, 1]} : vector<8x128xf32> to vector<8x32xf32>
    %50 = arith.mulf %47, %30 : vector<8x32xf32>
    %51 = arith.mulf %46, %48 : vector<8x32xf32>
    %52 = arith.addf %50, %51 : vector<8x32xf32>
    %53 = math.tanh %52 : vector<8x32xf32>
    %54 = arith.mulf %49, %53 : vector<8x32xf32>
    %55 = vector.extract_strided_slice %2 {offsets = [16, 0], sizes = [8, 128], strides = [1, 1]} : vector<64x128xf32> to vector<8x128xf32>
    %56 = arith.addf %55, %5 : vector<8x128xf32>
    %cst_14 = arith.constant dense<0.000000e+00> : vector<8x256xf32>
    %57 = tpu.matmul %54, %8, %cst_14 {dimension_numbers = #tpu.dot_dimension_numbers<[1], [0], [0], [1], [0, 0, 1, 1], [], []>} : vector<8x32xf32>, vector<32x256xf32>, vector<8x256xf32> -> vector<8x256xf32>
    %58 = vector.extract_strided_slice %57 {offsets = [0, 0], sizes = [8, 128], strides = [1, 1]} : vector<8x256xf32> to vector<8x128xf32>
    %59 = vector.extract_strided_slice %57 {offsets = [0, 128], sizes = [8, 128], strides = [1, 1]} : vector<8x256xf32> to vector<8x128xf32>
    %60 = arith.select %14, %58, %59 : vector<8x128xi1>, vector<8x128xf32>
    %61 = arith.addf %56, %60 : vector<8x128xf32>
    %62 = arith.negf %61 : vector<8x128xf32>
    %63 = math.exp %62 : vector<8x128xf32>
    %cst_15 = arith.constant 1.000000e+00 : f32
    %64 = vector.broadcast %cst_15 : f32 to vector<8x128xf32>
    %65 = arith.addf %64, %63 : vector<8x128xf32>
    %66 = arith.divf %64, %65 : vector<8x128xf32>
    %67 = math.tanh %61 : vector<8x128xf32>
    %68 = vector.extract_strided_slice %66 {offsets = [0, 0], sizes = [8, 32], strides = [1, 1]} : vector<8x128xf32> to vector<8x32xf32>
    %69 = vector.extract_strided_slice %66 {offsets = [0, 32], sizes = [8, 32], strides = [1, 1]} : vector<8x128xf32> to vector<8x32xf32>
    %70 = vector.extract_strided_slice %67 {offsets = [0, 64], sizes = [8, 32], strides = [1, 1]} : vector<8x128xf32> to vector<8x32xf32>
    %71 = vector.extract_strided_slice %66 {offsets = [0, 96], sizes = [8, 32], strides = [1, 1]} : vector<8x128xf32> to vector<8x32xf32>
    %72 = arith.mulf %69, %52 : vector<8x32xf32>
    %73 = arith.mulf %68, %70 : vector<8x32xf32>
    %74 = arith.addf %72, %73 : vector<8x32xf32>
    %75 = math.tanh %74 : vector<8x32xf32>
    %76 = arith.mulf %71, %75 : vector<8x32xf32>
    %77 = vector.extract_strided_slice %2 {offsets = [24, 0], sizes = [8, 128], strides = [1, 1]} : vector<64x128xf32> to vector<8x128xf32>
    %78 = arith.addf %77, %5 : vector<8x128xf32>
    %cst_16 = arith.constant dense<0.000000e+00> : vector<8x256xf32>
    %79 = tpu.matmul %76, %8, %cst_16 {dimension_numbers = #tpu.dot_dimension_numbers<[1], [0], [0], [1], [0, 0, 1, 1], [], []>} : vector<8x32xf32>, vector<32x256xf32>, vector<8x256xf32> -> vector<8x256xf32>
    %80 = vector.extract_strided_slice %79 {offsets = [0, 0], sizes = [8, 128], strides = [1, 1]} : vector<8x256xf32> to vector<8x128xf32>
    %81 = vector.extract_strided_slice %79 {offsets = [0, 128], sizes = [8, 128], strides = [1, 1]} : vector<8x256xf32> to vector<8x128xf32>
    %82 = arith.select %14, %80, %81 : vector<8x128xi1>, vector<8x128xf32>
    %83 = arith.addf %78, %82 : vector<8x128xf32>
    %84 = arith.negf %83 : vector<8x128xf32>
    %85 = math.exp %84 : vector<8x128xf32>
    %cst_17 = arith.constant 1.000000e+00 : f32
    %86 = vector.broadcast %cst_17 : f32 to vector<8x128xf32>
    %87 = arith.addf %86, %85 : vector<8x128xf32>
    %88 = arith.divf %86, %87 : vector<8x128xf32>
    %89 = math.tanh %83 : vector<8x128xf32>
    %90 = vector.extract_strided_slice %88 {offsets = [0, 0], sizes = [8, 32], strides = [1, 1]} : vector<8x128xf32> to vector<8x32xf32>
    %91 = vector.extract_strided_slice %88 {offsets = [0, 32], sizes = [8, 32], strides = [1, 1]} : vector<8x128xf32> to vector<8x32xf32>
    %92 = vector.extract_strided_slice %89 {offsets = [0, 64], sizes = [8, 32], strides = [1, 1]} : vector<8x128xf32> to vector<8x32xf32>
    %93 = vector.extract_strided_slice %88 {offsets = [0, 96], sizes = [8, 32], strides = [1, 1]} : vector<8x128xf32> to vector<8x32xf32>
    %94 = arith.mulf %91, %74 : vector<8x32xf32>
    %95 = arith.mulf %90, %92 : vector<8x32xf32>
    %96 = arith.addf %94, %95 : vector<8x32xf32>
    %97 = math.tanh %96 : vector<8x32xf32>
    %98 = arith.mulf %93, %97 : vector<8x32xf32>
    %99 = vector.extract_strided_slice %2 {offsets = [32, 0], sizes = [8, 128], strides = [1, 1]} : vector<64x128xf32> to vector<8x128xf32>
    %100 = arith.addf %99, %5 : vector<8x128xf32>
    %cst_18 = arith.constant dense<0.000000e+00> : vector<8x256xf32>
    %101 = tpu.matmul %98, %8, %cst_18 {dimension_numbers = #tpu.dot_dimension_numbers<[1], [0], [0], [1], [0, 0, 1, 1], [], []>} : vector<8x32xf32>, vector<32x256xf32>, vector<8x256xf32> -> vector<8x256xf32>
    %102 = vector.extract_strided_slice %101 {offsets = [0, 0], sizes = [8, 128], strides = [1, 1]} : vector<8x256xf32> to vector<8x128xf32>
    %103 = vector.extract_strided_slice %101 {offsets = [0, 128], sizes = [8, 128], strides = [1, 1]} : vector<8x256xf32> to vector<8x128xf32>
    %104 = arith.select %14, %102, %103 : vector<8x128xi1>, vector<8x128xf32>
    %105 = arith.addf %100, %104 : vector<8x128xf32>
    %106 = arith.negf %105 : vector<8x128xf32>
    %107 = math.exp %106 : vector<8x128xf32>
    %cst_19 = arith.constant 1.000000e+00 : f32
    %108 = vector.broadcast %cst_19 : f32 to vector<8x128xf32>
    %109 = arith.addf %108, %107 : vector<8x128xf32>
    %110 = arith.divf %108, %109 : vector<8x128xf32>
    %111 = math.tanh %105 : vector<8x128xf32>
    %112 = vector.extract_strided_slice %110 {offsets = [0, 0], sizes = [8, 32], strides = [1, 1]} : vector<8x128xf32> to vector<8x32xf32>
    %113 = vector.extract_strided_slice %110 {offsets = [0, 32], sizes = [8, 32], strides = [1, 1]} : vector<8x128xf32> to vector<8x32xf32>
    %114 = vector.extract_strided_slice %111 {offsets = [0, 64], sizes = [8, 32], strides = [1, 1]} : vector<8x128xf32> to vector<8x32xf32>
    %115 = vector.extract_strided_slice %110 {offsets = [0, 96], sizes = [8, 32], strides = [1, 1]} : vector<8x128xf32> to vector<8x32xf32>
    %116 = arith.mulf %113, %96 : vector<8x32xf32>
    %117 = arith.mulf %112, %114 : vector<8x32xf32>
    %118 = arith.addf %116, %117 : vector<8x32xf32>
    %119 = math.tanh %118 : vector<8x32xf32>
    %120 = arith.mulf %115, %119 : vector<8x32xf32>
    %121 = vector.extract_strided_slice %2 {offsets = [40, 0], sizes = [8, 128], strides = [1, 1]} : vector<64x128xf32> to vector<8x128xf32>
    %122 = arith.addf %121, %5 : vector<8x128xf32>
    %cst_20 = arith.constant dense<0.000000e+00> : vector<8x256xf32>
    %123 = tpu.matmul %120, %8, %cst_20 {dimension_numbers = #tpu.dot_dimension_numbers<[1], [0], [0], [1], [0, 0, 1, 1], [], []>} : vector<8x32xf32>, vector<32x256xf32>, vector<8x256xf32> -> vector<8x256xf32>
    %124 = vector.extract_strided_slice %123 {offsets = [0, 0], sizes = [8, 128], strides = [1, 1]} : vector<8x256xf32> to vector<8x128xf32>
    %125 = vector.extract_strided_slice %123 {offsets = [0, 128], sizes = [8, 128], strides = [1, 1]} : vector<8x256xf32> to vector<8x128xf32>
    %126 = arith.select %14, %124, %125 : vector<8x128xi1>, vector<8x128xf32>
    %127 = arith.addf %122, %126 : vector<8x128xf32>
    %128 = arith.negf %127 : vector<8x128xf32>
    %129 = math.exp %128 : vector<8x128xf32>
    %cst_21 = arith.constant 1.000000e+00 : f32
    %130 = vector.broadcast %cst_21 : f32 to vector<8x128xf32>
    %131 = arith.addf %130, %129 : vector<8x128xf32>
    %132 = arith.divf %130, %131 : vector<8x128xf32>
    %133 = math.tanh %127 : vector<8x128xf32>
    %134 = vector.extract_strided_slice %132 {offsets = [0, 0], sizes = [8, 32], strides = [1, 1]} : vector<8x128xf32> to vector<8x32xf32>
    %135 = vector.extract_strided_slice %132 {offsets = [0, 32], sizes = [8, 32], strides = [1, 1]} : vector<8x128xf32> to vector<8x32xf32>
    %136 = vector.extract_strided_slice %133 {offsets = [0, 64], sizes = [8, 32], strides = [1, 1]} : vector<8x128xf32> to vector<8x32xf32>
    %137 = vector.extract_strided_slice %132 {offsets = [0, 96], sizes = [8, 32], strides = [1, 1]} : vector<8x128xf32> to vector<8x32xf32>
    %138 = arith.mulf %135, %118 : vector<8x32xf32>
    %139 = arith.mulf %134, %136 : vector<8x32xf32>
    %140 = arith.addf %138, %139 : vector<8x32xf32>
    %141 = math.tanh %140 : vector<8x32xf32>
    %142 = arith.mulf %137, %141 : vector<8x32xf32>
    %143 = vector.extract_strided_slice %2 {offsets = [48, 0], sizes = [8, 128], strides = [1, 1]} : vector<64x128xf32> to vector<8x128xf32>
    %144 = arith.addf %143, %5 : vector<8x128xf32>
    %cst_22 = arith.constant dense<0.000000e+00> : vector<8x256xf32>
    %145 = tpu.matmul %142, %8, %cst_22 {dimension_numbers = #tpu.dot_dimension_numbers<[1], [0], [0], [1], [0, 0, 1, 1], [], []>} : vector<8x32xf32>, vector<32x256xf32>, vector<8x256xf32> -> vector<8x256xf32>
    %146 = vector.extract_strided_slice %145 {offsets = [0, 0], sizes = [8, 128], strides = [1, 1]} : vector<8x256xf32> to vector<8x128xf32>
    %147 = vector.extract_strided_slice %145 {offsets = [0, 128], sizes = [8, 128], strides = [1, 1]} : vector<8x256xf32> to vector<8x128xf32>
    %148 = arith.select %14, %146, %147 : vector<8x128xi1>, vector<8x128xf32>
    %149 = arith.addf %144, %148 : vector<8x128xf32>
    %150 = arith.negf %149 : vector<8x128xf32>
    %151 = math.exp %150 : vector<8x128xf32>
    %cst_23 = arith.constant 1.000000e+00 : f32
    %152 = vector.broadcast %cst_23 : f32 to vector<8x128xf32>
    %153 = arith.addf %152, %151 : vector<8x128xf32>
    %154 = arith.divf %152, %153 : vector<8x128xf32>
    %155 = math.tanh %149 : vector<8x128xf32>
    %156 = vector.extract_strided_slice %154 {offsets = [0, 0], sizes = [8, 32], strides = [1, 1]} : vector<8x128xf32> to vector<8x32xf32>
    %157 = vector.extract_strided_slice %154 {offsets = [0, 32], sizes = [8, 32], strides = [1, 1]} : vector<8x128xf32> to vector<8x32xf32>
    %158 = vector.extract_strided_slice %155 {offsets = [0, 64], sizes = [8, 32], strides = [1, 1]} : vector<8x128xf32> to vector<8x32xf32>
    %159 = vector.extract_strided_slice %154 {offsets = [0, 96], sizes = [8, 32], strides = [1, 1]} : vector<8x128xf32> to vector<8x32xf32>
    %160 = arith.mulf %157, %140 : vector<8x32xf32>
    %161 = arith.mulf %156, %158 : vector<8x32xf32>
    %162 = arith.addf %160, %161 : vector<8x32xf32>
    %163 = math.tanh %162 : vector<8x32xf32>
    %164 = arith.mulf %159, %163 : vector<8x32xf32>
    %165 = vector.extract_strided_slice %2 {offsets = [56, 0], sizes = [8, 128], strides = [1, 1]} : vector<64x128xf32> to vector<8x128xf32>
    %166 = arith.addf %165, %5 : vector<8x128xf32>
    %cst_24 = arith.constant dense<0.000000e+00> : vector<8x256xf32>
    %167 = tpu.matmul %164, %8, %cst_24 {dimension_numbers = #tpu.dot_dimension_numbers<[1], [0], [0], [1], [0, 0, 1, 1], [], []>} : vector<8x32xf32>, vector<32x256xf32>, vector<8x256xf32> -> vector<8x256xf32>
    %168 = vector.extract_strided_slice %167 {offsets = [0, 0], sizes = [8, 128], strides = [1, 1]} : vector<8x256xf32> to vector<8x128xf32>
    %169 = vector.extract_strided_slice %167 {offsets = [0, 128], sizes = [8, 128], strides = [1, 1]} : vector<8x256xf32> to vector<8x128xf32>
    %170 = arith.select %14, %168, %169 : vector<8x128xi1>, vector<8x128xf32>
    %171 = arith.addf %166, %170 : vector<8x128xf32>
    %172 = arith.negf %171 : vector<8x128xf32>
    %173 = math.exp %172 : vector<8x128xf32>
    %cst_25 = arith.constant 1.000000e+00 : f32
    %174 = vector.broadcast %cst_25 : f32 to vector<8x128xf32>
    %175 = arith.addf %174, %173 : vector<8x128xf32>
    %176 = arith.divf %174, %175 : vector<8x128xf32>
    %177 = math.tanh %171 : vector<8x128xf32>
    %178 = vector.extract_strided_slice %176 {offsets = [0, 0], sizes = [8, 32], strides = [1, 1]} : vector<8x128xf32> to vector<8x32xf32>
    %179 = vector.extract_strided_slice %176 {offsets = [0, 32], sizes = [8, 32], strides = [1, 1]} : vector<8x128xf32> to vector<8x32xf32>
    %180 = vector.extract_strided_slice %177 {offsets = [0, 64], sizes = [8, 32], strides = [1, 1]} : vector<8x128xf32> to vector<8x32xf32>
    %181 = vector.extract_strided_slice %176 {offsets = [0, 96], sizes = [8, 32], strides = [1, 1]} : vector<8x128xf32> to vector<8x32xf32>
    %182 = arith.mulf %179, %162 : vector<8x32xf32>
    %183 = arith.mulf %178, %180 : vector<8x32xf32>
    %184 = arith.addf %182, %183 : vector<8x32xf32>
    %185 = math.tanh %184 : vector<8x32xf32>
    %186 = arith.mulf %181, %185 : vector<8x32xf32>
    %cst_26 = arith.constant dense<0.000000e+00> : vector<8x128xf32>
    %187 = tpu.matmul %32, %9, %cst_26 {dimension_numbers = #tpu.dot_dimension_numbers<[1], [0], [0], [1], [0, 0, 1, 1], [], []>} : vector<8x32xf32>, vector<32x128xf32>, vector<8x128xf32> -> vector<8x128xf32>
    %188 = vector.extract_strided_slice %187 {offsets = [0, 0], sizes = [8, 64], strides = [1, 1]} : vector<8x128xf32> to vector<8x64xf32>
    %189 = vector.broadcast %11 : vector<1x64xf32> to vector<8x64xf32>
    %190 = arith.addf %188, %189 : vector<8x64xf32>
    %cst_27 = arith.constant dense<0.000000e+00> : vector<8x128xf32>
    %191 = tpu.matmul %54, %9, %cst_27 {dimension_numbers = #tpu.dot_dimension_numbers<[1], [0], [0], [1], [0, 0, 1, 1], [], []>} : vector<8x32xf32>, vector<32x128xf32>, vector<8x128xf32> -> vector<8x128xf32>
    %192 = vector.extract_strided_slice %191 {offsets = [0, 0], sizes = [8, 64], strides = [1, 1]} : vector<8x128xf32> to vector<8x64xf32>
    %193 = vector.broadcast %11 : vector<1x64xf32> to vector<8x64xf32>
    %194 = arith.addf %192, %193 : vector<8x64xf32>
    %cst_28 = arith.constant dense<0.000000e+00> : vector<8x128xf32>
    %195 = tpu.matmul %76, %9, %cst_28 {dimension_numbers = #tpu.dot_dimension_numbers<[1], [0], [0], [1], [0, 0, 1, 1], [], []>} : vector<8x32xf32>, vector<32x128xf32>, vector<8x128xf32> -> vector<8x128xf32>
    %196 = vector.extract_strided_slice %195 {offsets = [0, 0], sizes = [8, 64], strides = [1, 1]} : vector<8x128xf32> to vector<8x64xf32>
    %197 = vector.broadcast %11 : vector<1x64xf32> to vector<8x64xf32>
    %198 = arith.addf %196, %197 : vector<8x64xf32>
    %cst_29 = arith.constant dense<0.000000e+00> : vector<8x128xf32>
    %199 = tpu.matmul %98, %9, %cst_29 {dimension_numbers = #tpu.dot_dimension_numbers<[1], [0], [0], [1], [0, 0, 1, 1], [], []>} : vector<8x32xf32>, vector<32x128xf32>, vector<8x128xf32> -> vector<8x128xf32>
    %200 = vector.extract_strided_slice %199 {offsets = [0, 0], sizes = [8, 64], strides = [1, 1]} : vector<8x128xf32> to vector<8x64xf32>
    %201 = vector.broadcast %11 : vector<1x64xf32> to vector<8x64xf32>
    %202 = arith.addf %200, %201 : vector<8x64xf32>
    %cst_30 = arith.constant dense<0.000000e+00> : vector<8x128xf32>
    %203 = tpu.matmul %120, %9, %cst_30 {dimension_numbers = #tpu.dot_dimension_numbers<[1], [0], [0], [1], [0, 0, 1, 1], [], []>} : vector<8x32xf32>, vector<32x128xf32>, vector<8x128xf32> -> vector<8x128xf32>
    %204 = vector.extract_strided_slice %203 {offsets = [0, 0], sizes = [8, 64], strides = [1, 1]} : vector<8x128xf32> to vector<8x64xf32>
    %205 = vector.broadcast %11 : vector<1x64xf32> to vector<8x64xf32>
    %206 = arith.addf %204, %205 : vector<8x64xf32>
    %cst_31 = arith.constant dense<0.000000e+00> : vector<8x128xf32>
    %207 = tpu.matmul %142, %9, %cst_31 {dimension_numbers = #tpu.dot_dimension_numbers<[1], [0], [0], [1], [0, 0, 1, 1], [], []>} : vector<8x32xf32>, vector<32x128xf32>, vector<8x128xf32> -> vector<8x128xf32>
    %208 = vector.extract_strided_slice %207 {offsets = [0, 0], sizes = [8, 64], strides = [1, 1]} : vector<8x128xf32> to vector<8x64xf32>
    %209 = vector.broadcast %11 : vector<1x64xf32> to vector<8x64xf32>
    %210 = arith.addf %208, %209 : vector<8x64xf32>
    %cst_32 = arith.constant dense<0.000000e+00> : vector<8x128xf32>
    %211 = tpu.matmul %164, %9, %cst_32 {dimension_numbers = #tpu.dot_dimension_numbers<[1], [0], [0], [1], [0, 0, 1, 1], [], []>} : vector<8x32xf32>, vector<32x128xf32>, vector<8x128xf32> -> vector<8x128xf32>
    %212 = vector.extract_strided_slice %211 {offsets = [0, 0], sizes = [8, 64], strides = [1, 1]} : vector<8x128xf32> to vector<8x64xf32>
    %213 = vector.broadcast %11 : vector<1x64xf32> to vector<8x64xf32>
    %214 = arith.addf %212, %213 : vector<8x64xf32>
    %cst_33 = arith.constant dense<0.000000e+00> : vector<8x128xf32>
    %215 = tpu.matmul %186, %9, %cst_33 {dimension_numbers = #tpu.dot_dimension_numbers<[1], [0], [0], [1], [0, 0, 1, 1], [], []>} : vector<8x32xf32>, vector<32x128xf32>, vector<8x128xf32> -> vector<8x128xf32>
    %216 = vector.extract_strided_slice %215 {offsets = [0, 0], sizes = [8, 64], strides = [1, 1]} : vector<8x128xf32> to vector<8x64xf32>
    %217 = vector.broadcast %11 : vector<1x64xf32> to vector<8x64xf32>
    %218 = arith.addf %216, %217 : vector<8x64xf32>
    %219 = tpu.concatenate %190, %194, %198, %202, %206, %210, %214, %218 in 1 : vector<8x64xf32>, vector<8x64xf32>, vector<8x64xf32>, vector<8x64xf32>, vector<8x64xf32>, vector<8x64xf32>, vector<8x64xf32>, vector<8x64xf32> -> vector<8x512xf32>
    %220 = vector.extract_strided_slice %219 {offsets = [0, 0], sizes = [6, 512], strides = [1, 1]} : vector<8x512xf32> to vector<6x512xf32>
    %c0_34 = arith.constant 0 : index
    %c0_35 = arith.constant 0 : index
    %221 = vector.load %arg2[%c0_34, %c0_35] : memref<6x512xf32, #tpu.memory_space<vmem>>, vector<6x512xf32>
    tpu.vector_store %arg2[%c0_34, %c0_35], %220 {strides = array<i32>} : memref<6x512xf32, #tpu.memory_space<vmem>>, vector<6x512xf32>,
    return
  }
}

</mosaic_0001>

<bundles_post_ra>
// kernel: squeeze.2
= control target key start
LH: loop header
LB: loop body
LE: loop exit
PB: predicated region body
PF: predicated region fallthrough
CT: control target
= control target key end

     0   :  { %s139_s0 = inlined_call_operand.vmem [shape: f32[3,512], index: 0, kind: input, shape index: {}]   ;;  %s140_s1 = inlined_call_operand.hbm [shape: f32[3,8,64], index: 1, kind: output, shape index: {}]  }
   0x1   :  { %v68_v0 = vld [vmem:[%s139_s0 + $0xc] sm:$0xf]  ;;  %v69_v1 = vld [vmem:[%s139_s0 + $0x8] sm:$0xf]  ;;  %v70_v2 = vld [vmem:[%s139_s0 + $0x4] sm:$0xf] }
   0x2   :  { %9 = vst [vmem:[#allocation2 + $0x18] sm:$0xf] %v68_v0  ;;  %14 = vst [vmem:[#allocation2 + $0x10] sm:$0xf] %v69_v1  ;;  %v19_v3 = vld [vmem:[%s139_s0] sm:$0xf] }
   0x3   :  { %18 = vst [vmem:[#allocation2 + $0x8] sm:$0xf] %v70_v2  ;;  %20 = vst [vmem:[#allocation2] sm:$0xf] %v19_v3 }
   0x4   :  { %2 = vsyncpa [#allocation1], 0  ;;  %vm42_vm0 = vcmask 1047556   ;;  %vm22_vm1 = vcmask 523264   ;;  %s97_s0 = smov 64   ;;  %s98_s14 = smov [#allocation0]  }
   0x5   :  { %s60_s15 = sshll.u32 %s98_s14, 4  ;;  %s61_s15 = int_to_ptr.vmem [resolvable:$true] %s60_s15 }
   0x6   :  { %s73_s16 = scalar_lea.vmem %s61_s15, 384  ;;  %p78_p1 = scmp.lt.s32.totalorder %s61_s15, %s61_s15 }
   0x7   :  { %p74_p0 = scmp.ne.s32.totalorder %s61_s15, %s73_s16  ;;  %p79_p2 = scmp.lt.s32.totalorder %s73_s16, %s73_s16 }
   0x9   :  { %v30_v5 = vld [vmem:[#allocation2 + $0x10] sm:$0x7]   ;;  %v35_v6 = vld [vmem:[#allocation2 + $0x18] sm:$0x7]   ;;  %p80_p3 = por %p79_p2, %p78_p1 }
   0xa   :  { %v25_v4 = vld [vmem:[#allocation2 + $0x8] sm:$0x7]   ;;  %33 = vst.msk [vmem:[#allocation0 + $0x4] ss:$8 sm:$0x7] %vm22_vm1, %v30_v5  }
   0xb   :  { %v39_v7 = vld [vmem:[#allocation2] ss:$8 sm:$0xf]   ;;  %v41_v8 = vld [vmem:[#allocation2 - $0x1f] ss:$8 sm:$0xf0]   ;;  %p81_p4 = pnand %p80_p3, %p74_p0 }
   0xc   :  { %28 = vst.msk [vmem:[#allocation0 + $0x2] ss:$8 sm:$0x7] %vm22_vm1, %v25_v4   ;;  %38 = vst.msk [vmem:[#allocation0 + $0x6] ss:$8 sm:$0x7] %vm22_vm1, %v35_v6   ;;  %v43_v9 = vsel %vm42_vm0, %v41_v8, %v39_v7 }
   0xd   :  { %v21_v10 = vld [vmem:[#allocation2] sm:$0x7]   ;;  %44 = vrot.lane.b32.xlu0 %v43_v9, %s97_s0 }
   0xe   :  { %23 = vst.msk [vmem:[#allocation0] ss:$8 sm:$0x7] %vm22_vm1, %v21_v10   ;;  %v50_v11 = vld [vmem:[#allocation2 + $0x2] ss:$8 sm:$0xf]  }
  0x11   :  { %51 = vrot.lane.b32.xlu0 %v50_v11, %s97_s0 }
  0x7f   :  { %v45_v12 = vpop.permute.xlu0 %44  }
  0x80   :  { %48 = vst.msk [vmem:[#allocation0 + $0x1] ss:$2 sm:$0xff] %vm22_vm1, %v45_v12  }
  0x83   :  { %v52_v13 = vpop.permute.xlu0 %51  }
  0x84   :  { %55 = vst.msk [vmem:[#allocation0 + $0x11] ss:$2 sm:$0xf] %vm22_vm1, %v52_v13  }
  0x85   :  { %84 = shalt.err (!%p81_p4)
}
  0x86   :  { %s85_s19 = scalar_lea.hbm %s140_s1, 384 }
  0x87   :  { %p86_p5 = scmp.ne.s32.totalorder %s140_s1, %s85_s19  ;;  %p89_p6 = scmp.lt.u32.totalorder %s85_s19, %s140_s1 }
  0x89   :  { %p91_p7 = pnand %p89_p6, %p86_p5 }
  0x8b   :  { %94 = shalt.err (!%p91_p7)
}
  0x8c   :  { %63 = dma.vmem_to_hbm [thread:$0]  %s61_s15, 384, %s140_s1, [#allocation1]  }
  0x8d   :  { %95 = dma.done.wait [#allocation1], 384  }
  0x8e   :  { %96 = vsyncadd [#allocation1], 4294966912 }
  0x8f   :  { %65 = vsyncpa [#allocation1], 1 }

// kernel: duo_decoder_forward.1
= control target key start
LH: loop header
LB: loop body
LE: loop exit
PB: predicated region body
PF: predicated region fallthrough
CT: control target
= control target key end

     0   :  { %v2097_v2 = vmov 0.0|0.0   ;;  %vm2098_vm0 = vmmov 0   ;;  %v2099_v4 = vmov 0.0   ;;  %s2101_s7 = smov 32   ;;  %vm272_vm1 = vcmask 261120   ;;  %s2518_s1 = inlined_call_operand.vmem [shape: f32[360,128], index: 1, kind: input, shape index: {}]   ;;  %s2519_s0 = inlined_call_operand.vmem [shape: f32[72,128], index: 0, kind: input, shape index: {}]   ;;  %s2520_s2 = inlined_call_operand.vmem [shape: f32[6,512], index: 2, kind: output, shape index: {}]  }
   0x1   :  { %v19_v0 = vld [vmem:[%s2518_s1] sm:$0xff]  ;;  %v20_v1 = vld [vmem:[%s2518_s1 + $0x8] sm:$0xff]  ;;  %1900 = vmatprep.subr.bf16.mxu1 %v2097_v2  ;;  %1777 = vmatprep.mubr.msk.f32.mxu1 %vm2098_vm0, %v2099_v4  ;;  %v21_v7 = vld [vmem:[%s2518_s1 + $0x10] sm:$0xff]  ;;  %vm1583_vm3 = vcmask 523264  }
   0x2   :  { %v141_v3 = vld [vmem:[%s2518_s1 + $0x80] sm:$0xff]  ;;  %v1868_v5 = vpack.c.bf16 %v20_v1, %v19_v0  ;;  %v142_v6 = vld [vmem:[%s2518_s1 + $0x88] sm:$0xff]  ;;  %v22_v8 = vld [vmem:[%s2518_s1 + $0x18] sm:$0xff] }
   0x3   :  { %v1901_v9 = vpack.c.bf16 %v142_v6, %v141_v3  ;;  %v1872_v10 = vpack.c.bf16 %v22_v8, %v21_v7  ;;  %v143_v11 = vld [vmem:[%s2518_s1 + $0x90] sm:$0xff]  ;;  %v144_v12 = vld [vmem:[%s2518_s1 + $0x98] sm:$0xff]  ;;  %v23_v13 = vld [vmem:[%s2518_s1 + $0x20] sm:$0xff] }
   0x4   :  { %1869 = vmatprep.subr.bf16.mxu0 %v1868_v5  ;;  %v24_v14 = vld [vmem:[%s2518_s1 + $0x28] sm:$0xff]  ;;  %v1904_v15 = vpack.c.bf16 %v144_v12, %v143_v11  ;;  %v145_v17 = vld [vmem:[%s2518_s1 + $0xa0] sm:$0xff]  ;;  %v25_v19 = vld [vmem:[%s2518_s1 + $0x30] sm:$0xff] }
   0x5   :  { %1871 = vmatpush3.bf16.msra.mxu0 %v1868_v5  ;;  %1902 = vmatpush3.bf16.msra.mxu1 %v1901_v9  ;;  %v1876_v16 = vpack.c.bf16 %v24_v14, %v23_v13  ;;  %v146_v18 = vld [vmem:[%s2518_s1 + $0xa8] sm:$0xff]  ;;  %v26_v20 = vld [vmem:[%s2518_s1 + $0x38] sm:$0xff]  ;;  %v147_v23 = vld [vmem:[%s2518_s1 + $0xb0] sm:$0xff] }
   0x6   :  { %1873 = vmatprep.subr.bf16.mxu0 %v1872_v10  ;;  %1903 = vmatprep.subr.bf16.mxu1 %v2097_v2  ;;  %v1907_v21 = vpack.c.bf16 %v146_v18, %v145_v17  ;;  %v1880_v22 = vpack.c.bf16 %v26_v20, %v25_v19  ;;  %v148_v24 = vld [vmem:[%s2518_s1 + $0xb8] sm:$0xff]  ;;  %v27_v25 = vld [vmem:[%s2518_s1 + $0x40] sm:$0xff]  ;;  %v28_v26 = vld [vmem:[%s2518_s1 + $0x48] sm:$0xff] }
   0x7   :  { %v11_v27 = vld [vmem:[%s2519_s0] sm:$0xff]  ;;  %v1910_v28 = vpack.c.bf16 %v148_v24, %v147_v23  ;;  %v1884_v29 = vpack.c.bf16 %v28_v26, %v27_v25  ;;  %v150_v31 = vld [vmem:[%s2518_s1 + $0xc8] sm:$0xff]  ;;  %v29_v32 = vld [vmem:[%s2518_s1 + $0x50] sm:$0xff] }
   0x8   :  { %1733 = vmatprep.mubr.f32.mxu0 %v11_v27  ;;  %v149_v30 = vld [vmem:[%s2518_s1 + $0xc0] sm:$0xff]  ;;  %v30_v33 = vld [vmem:[%s2518_s1 + $0x58] sm:$0xff]  ;;  %v151_v36 = vld [vmem:[%s2518_s1 + $0xd0] sm:$0xff] }
   0x9   :  { %1875 = vmatpush3.bf16.msra.mxu0 %v1872_v10  ;;  %1905 = vmatpush3.bf16.msra.mxu1 %v1904_v15  ;;  %v1913_v34 = vpack.c.bf16 %v150_v31, %v149_v30  ;;  %v1888_v35 = vpack.c.bf16 %v30_v33, %v29_v32  ;;  %v152_v37 = vld [vmem:[%s2518_s1 + $0xd8] sm:$0xff]  ;;  %v31_v38 = vld [vmem:[%s2518_s1 + $0x60] sm:$0xff]  ;;  %v32_v39 = vld [vmem:[%s2518_s1 + $0x68] sm:$0xff] }
   0xa   :  { %1877 = vmatprep.subr.bf16.mxu0 %v1876_v16  ;;  %1906 = vmatprep.subr.bf16.mxu1 %v2097_v2  ;;  %v1916_v40 = vpack.c.bf16 %v152_v37, %v151_v36  ;;  %v1892_v41 = vpack.c.bf16 %v32_v39, %v31_v38  ;;  %v153_v42 = vld [vmem:[%s2518_s1 + $0xe0] sm:$0xff]  ;;  %v154_v43 = vld [vmem:[%s2518_s1 + $0xe8] sm:$0xff]  ;;  %v33_v44 = vld [vmem:[%s2518_s1 + $0x70] sm:$0xff] }
   0xb   :  { %v34_v45 = vld [vmem:[%s2518_s1 + $0x78] sm:$0xff]  ;;  %v1919_v46 = vpack.c.bf16 %v154_v43, %v153_v42  ;;  %v155_v48 = vld [vmem:[%s2518_s1 + $0xf0] sm:$0xff]  ;;  %v12_v51 = vld [vmem:[%s2519_s0 + $0x8] sm:$0xff] }
   0xc   :  { %v1896_v47 = vpack.c.bf16 %v34_v45, %v33_v44  ;;  %v156_v49 = vld [vmem:[%s2518_s1 + $0xf8] sm:$0xff]  ;;  %v140_v52 = vld [vmem:[%s2519_s0 + $0x40] sm:$0xff]  ;;  %v13_v53 = vld [vmem:[%s2519_s0 + $0x10] sm:$0xff] }
   0xd   :  { %1879 = vmatpush3.bf16.msra.mxu0 %v1876_v16  ;;  %1908 = vmatpush3.bf16.msra.mxu1 %v1907_v21  ;;  %v1922_v50 = vpack.c.bf16 %v156_v49, %v155_v48  ;;  %v14_v54 = vld [vmem:[%s2519_s0 + $0x18] sm:$0xff]  ;;  %v15_v55 = vld [vmem:[%s2519_s0 + $0x20] sm:$0xff]  ;;  %v16_v56 = vld [vmem:[%s2519_s0 + $0x28] sm:$0xff] }
   0xe   :  { %1881 = vmatprep.subr.bf16.mxu0 %v1880_v22  ;;  %1909 = vmatprep.subr.bf16.mxu1 %v2097_v2  ;;  %v17_v57 = vld [vmem:[%s2519_s0 + $0x30] sm:$0xff]  ;;  %v18_v58 = vld [vmem:[%s2519_s0 + $0x38] sm:$0xff]  ;;  %s2100_s0 = smov 64   ;;  %v231_v25 = vld [vmem:[%s2518_s1 + $0x120] sm:$0xff] }
   0xf   :  { %v232_v26 = vld [vmem:[%s2518_s1 + $0x128] sm:$0xff]  ;;  %v227_v27 = vld [vmem:[%s2518_s1 + $0x100] sm:$0xff]  ;;  %v233_v30 = vld [vmem:[%s2518_s1 + $0x130] sm:$0xff] }
  0x10   :  { %v234_v31 = vld [vmem:[%s2518_s1 + $0x138] sm:$0xff] }
  0x11   :  { %1883 = vmatpush3.bf16.msra.mxu0 %v1880_v22  ;;  %1911 = vmatpush3.bf16.msra.mxu1 %v1910_v28  ;;  %v2277_v28 = vpack.c.bf16 %v232_v26, %v231_v25  ;;  %v2290_v33 = vpack.c.bf16 %v234_v31, %v233_v30 }
  0x12   :  { %1885 = vmatprep.subr.bf16.mxu0 %v1884_v29  ;;  %1912 = vmatprep.subr.bf16.mxu1 %v2097_v2 }
  0x15   :  { %1887 = vmatpush3.bf16.msra.mxu0 %v1884_v29  ;;  %1914 = vmatpush3.bf16.msra.mxu1 %v1913_v34  ;;  %v228_v29 = vld [vmem:[%s2518_s1 + $0x108] sm:$0xff]  ;;  %v229_v34 = vld [vmem:[%s2518_s1 + $0x110] sm:$0xff] }
  0x16   :  { %1889 = vmatprep.subr.bf16.mxu0 %v1888_v35  ;;  %1915 = vmatprep.subr.bf16.mxu1 %v2097_v2  ;;  %v2288_v32 = vpack.c.bf16 %v228_v29, %v227_v27 }
  0x19   :  { %1891 = vmatpush3.bf16.msra.mxu0 %v1888_v35  ;;  %1917 = vmatpush3.bf16.msra.mxu1 %v1916_v40  ;;  %v230_v35 = vld [vmem:[%s2518_s1 + $0x118] sm:$0xff] }
  0x1a   :  { %1893 = vmatprep.subr.bf16.mxu0 %v1892_v41  ;;  %1918 = vmatprep.subr.bf16.mxu1 %v2097_v2  ;;  %v2301_v36 = vpack.c.bf16 %v230_v35, %v229_v34 }
  0x1d   :  { %1895 = vmatpush3.bf16.msra.mxu0 %v1892_v41  ;;  %1920 = vmatpush3.bf16.msra.mxu1 %v1919_v46  ;;  %v240_v41 = vlaneseq }
  0x1e   :  { %1897 = vmatprep.subr.bf16.mxu0 %v1896_v47  ;;  %1921 = vmatprep.subr.bf16.mxu1 %v2097_v2 }
  0x1f   :  { %v2321_v42 = vshrl.u32 %v240_v41, 7 }
  0x21   :  { %1899 = vmatpush3.bf16.msra.mxu0 %v1896_v47  ;;  %1923 = vmatpush3.bf16.msra.mxu1 %v1922_v50  ;;  %vm242_vm2 = vcmp.lt.s32.totalorder %v2321_v42, 3 }
  0x22   :  { %1925 = vmatprep.subr.bf16.mxu1 %v2277_v28  ;;  %1933 = vmatprep.subr.bf16.mxu0 %v2277_v28 }
  0x24   :  { %1734 = vmatmul.mubr.f32.vlgmr.msra.gmra.mrb[0].mxu0 %v12_v51  ;;  %1778 = vmatmul.mubr.f32.vlgmr.msra.gmra.mrb[0].mxu1 %v140_v52 }
  0x25   :  { %1736 = vmatprep.mubr.f32.mxu0 %v13_v53  ;;  %339 = vmatprep.mubr.f32.mxu1 %v2099_v4 }
  0x26   :  { %1927 = vmatpush1.bf16.msra.mxu1 %v2288_v32  ;;  %1935 = vmatpush1.bf16.msra.mxu0 %v2288_v32 }
  0x27   :  { %1929 = vmatprep.subr.bf16.mxu1 %v2290_v33  ;;  %1937 = vmatprep.subr.bf16.mxu0 %v2290_v33 }
  0x28   :  { %1737 = vmatmul.mubr.f32.gmra.mrb[2].mxu0 %v14_v54 }
  0x29   :  { %1739 = vmatprep.mubr.f32.mxu0 %v15_v55 }
  0x2a   :  { %1931 = vmatpush1.bf16.msra.mxu1 %v2301_v36  ;;  %1939 = vmatpush1.bf16.msra.mxu0 %v2301_v36 }
  0x2b   :  { %1941 = vmatprep.subr.bf16.mxu1 %v2277_v28  ;;  %1949 = vmatprep.subr.bf16.mxu0 %v2277_v28 }
  0x2c   :  { %1740 = vmatmul.mubr.f32.gmra.mrb[4].mxu0 %v16_v56 }
  0x2d   :  { %1742 = vmatprep.mubr.f32.mxu0 %v17_v57 }
  0x30   :  { %1743 = vmatmul.mubr.f32.gmra.mrb[6].mxu0 %v18_v58 }
  0x31   :  { %442 = vmatprep.mubr.f32.mxu0 %v2099_v4 }
  0xf7   :  { %v1735_v59 = vpop.f32.mrb[0].mxu0  ;;  %v223_v60 = vpop.f32.mrb[0].mxu1 }
  0xf8   :  { %v101_v61 = vpop.f32.mrb[1].mxu0  ;;  %v1779_v62 = vpop.f32.mrb[1].mxu1  ;;  %v2252_v63 = vadd.f32 %v1735_v59, %v223_v60 }
  0xf9   :  { %v243_v0 = vadd.f32 %v223_v60, %v101_v61 }
  0xfb   :  { %2033 = vtanh.f32 %v243_v0  ;;  %v1738_v1 = vpop.f32.mrb[2].mxu0  ;;  %v1596_v16 = vmul.f32 -1.442695, %v243_v0 }
  0xfc   :  { %v2254_v3 = vadd.f32 %v1738_v1, %v223_v60  ;;  %v111_v5 = vpop.f32.mrb[3].mxu0 }
  0xfd   :  { %v2256_v6 = vadd.f32 %v223_v60, %v111_v5  ;;  %2035 = vpow2.f32 %v1596_v16 }
  0xff   :  { %v1741_v7 = vpop.f32.mrb[4].mxu0 }
 0x100   :  { %v2258_v8 = vadd.f32 %v1741_v7, %v223_v60  ;;  %v121_v9 = vpop.f32.mrb[5].mxu0 }
 0x101   :  { %v2260_v10 = vadd.f32 %v223_v60, %v121_v9 }
 0x103   :  { %v1744_v11 = vpop.f32.mrb[6].mxu0 }
 0x104   :  { %v2262_v12 = vadd.f32 %v1744_v11, %v223_v60  ;;  %v131_v13 = vpop.f32.mrb[7].mxu0 }
 0x105   :  { %v2034_v14 = vpop.eup %2033  ;;  %v2264_v15 = vadd.f32 %v223_v60, %v131_v13 }
 0x106   :  { %253 = vrot.lane.b32.xlu0 %v2034_v14, %s2100_s0 }
 0x107   :  { %v2036_v17 = vpop.eup %2035 }
 0x108   :  { %v247_v18 = vadd.f32 1.0, %v2036_v17 }
 0x10a   :  { %2037 = vrcp.f32 %v247_v18 }
 0x114   :  { %v2038_v19 = vpop.eup %2037 }
 0x115   :  { %v251_v22 = vmul.f32 0.0, %v2038_v19 }
 0x178   :  { %v254_v20 = vpop.permute.xlu0 %253 }
 0x179   :  { %v256_v21 = vmul.f32 %v2038_v19, %v254_v20 }
 0x17b   :  { %258 = vrot.lane.b32.xlu0 %v256_v21, %s2101_s7 }
 0x1ed   :  { %v259_v23 = vpop.permute.xlu0 %258 }
 0x1ee   :  { %v261_v24 = vadd.f32 %v259_v23, %v251_v22 }
 0x1f0   :  { %2039 = vtanh.f32 %v261_v24 }
 0x1fa   :  { %v2040_v37 = vpop.eup %2039 }
 0x1fb   :  { %264 = vrot.lane.b32.xlu1 %v2040_v37, %s2100_s0 }
 0x26d   :  { %v265_v38 = vpop.permute.xlu1 %264 }
 0x26e   :  { %v267_v39 = vmul.f32 %v2038_v19, %v265_v38 }
 0x270   :  { %270 = vrot.lane.b32.xlu1 %v267_v39, %s2101_s7 }
 0x2e2   :  { %v2312_v40 = vpop.permute.xlu1 %270 }
 0x2e3   :  { %1597 = vmatmul.mubr.msk.f32.vlgmr.msra.gmra.mrb[2].mxu1 %vm272_vm1, %v2312_v40 }
 0x2e4   :  { %1943 = vmatpush1.bf16.msra.mxu1 %v2288_v32  ;;  %545 = vmatprep.mubr.f32.mxu1 %v2099_v4 }
 0x2e5   :  { %1945 = vmatprep.subr.bf16.mxu1 %v2290_v33 }
 0x2e8   :  { %1947 = vmatpush1.bf16.msra.mxu1 %v2301_v36 }
 0x2e9   :  { %1957 = vmatprep.subr.bf16.mxu1 %v2277_v28 }
 0x3b6   :  { %v341_v43 = vpop.f32.mrb[2].mxu1 }
 0x3b7   :  { %v343_v44 = vpop.f32.mrb[3].mxu1 }
 0x3b8   :  { %v346_v45 = vsel %vm242_vm2, %v341_v43, %v343_v44 }
 0x3b9   :  { %v347_v46 = vadd.f32 %v346_v45, %v2252_v63 }
 0x3bb   :  { %2041 = vtanh.f32 %v347_v46  ;;  %v1598_v48 = vmul.f32 -1.442695, %v347_v46 }
 0x3bd   :  { %2043 = vpow2.f32 %v1598_v48 }
 0x3c5   :  { %v2042_v47 = vpop.eup %2041 }
 0x3c6   :  { %357 = vrot.lane.b32.xlu0 %v2042_v47, %s2100_s0 }
 0x3c7   :  { %v2044_v49 = vpop.eup %2043 }
 0x3c8   :  { %v351_v50 = vadd.f32 1.0, %v2044_v49 }
 0x3ca   :  { %2045 = vrcp.f32 %v351_v50 }
 0x3d4   :  { %v2046_v51 = vpop.eup %2045 }
 0x3d5   :  { %v355_v54 = vmul.f32 %v2046_v51, %v261_v24 }
 0x438   :  { %v358_v52 = vpop.permute.xlu0 %357 }
 0x439   :  { %v360_v53 = vmul.f32 %v2046_v51, %v358_v52 }
 0x43b   :  { %362 = vrot.lane.b32.xlu1 %v360_v53, %s2101_s7 }
 0x4ad   :  { %v363_v55 = vpop.permute.xlu1 %362 }
 0x4ae   :  { %v365_v56 = vadd.f32 %v363_v55, %v355_v54 }
 0x4b0   :  { %2047 = vtanh.f32 %v365_v56 }
 0x4ba   :  { %v2048_v57 = vpop.eup %2047 }
 0x4bb   :  { %368 = vrot.lane.b32.xlu0 %v2048_v57, %s2100_s0 }
 0x52d   :  { %v369_v58 = vpop.permute.xlu0 %368 }
 0x52e   :  { %v371_v59 = vmul.f32 %v2046_v51, %v369_v58 }
 0x530   :  { %374 = vrot.lane.b32.xlu1 %v371_v59, %s2101_s7 }
 0x5a2   :  { %v2331_v60 = vpop.permute.xlu1 %374 }
 0x5a3   :  { %1599 = vmatmul.mubr.msk.f32.vlgmr.msra.gmra.mrb[8].mxu0 %vm272_vm1, %v2331_v60 }
 0x5a4   :  { %1951 = vmatpush1.bf16.msra.mxu0 %v2288_v32  ;;  %648 = vmatprep.mubr.f32.mxu0 %v2099_v4 }
 0x5a5   :  { %1953 = vmatprep.subr.bf16.mxu0 %v2290_v33 }
 0x5a8   :  { %1955 = vmatpush1.bf16.msra.mxu0 %v2301_v36 }
 0x5a9   :  { %1965 = vmatprep.subr.bf16.mxu0 %v2277_v28 }
 0x676   :  { %v444_v61 = vpop.f32.mrb[8].mxu0 }
 0x677   :  { %v446_v62 = vpop.f32.mrb[9].mxu0 }
 0x678   :  { %v449_v63 = vsel %vm242_vm2, %v444_v61, %v446_v62 }
 0x679   :  { %v450_v0 = vadd.f32 %v449_v63, %v2256_v6 }
 0x67b   :  { %2049 = vtanh.f32 %v450_v0  ;;  %v1600_v5 = vmul.f32 -1.442695, %v450_v0 }
 0x67d   :  { %2051 = vpow2.f32 %v1600_v5 }
 0x685   :  { %v2050_v1 = vpop.eup %2049 }
 0x686   :  { %460 = vrot.lane.b32.xlu0 %v2050_v1, %s2100_s0 }
 0x687   :  { %v2052_v7 = vpop.eup %2051 }
 0x688   :  { %v454_v9 = vadd.f32 1.0, %v2052_v7 }
 0x68a   :  { %2053 = vrcp.f32 %v454_v9 }
 0x694   :  { %v2054_v11 = vpop.eup %2053 }
 0x695   :  { %v458_v16 = vmul.f32 %v2054_v11, %v365_v56 }
 0x6f8   :  { %v461_v13 = vpop.permute.xlu0 %460 }
 0x6f9   :  { %v463_v14 = vmul.f32 %v2054_v11, %v461_v13 }
 0x6fb   :  { %465 = vrot.lane.b32.xlu1 %v463_v14, %s2101_s7 }
 0x76d   :  { %v466_v17 = vpop.permute.xlu1 %465 }
 0x76e   :  { %v468_v18 = vadd.f32 %v466_v17, %v458_v16 }
 0x770   :  { %2055 = vtanh.f32 %v468_v18 }
 0x77a   :  { %v2056_v19 = vpop.eup %2055 }
 0x77b   :  { %471 = vrot.lane.b32.xlu0 %v2056_v19, %s2100_s0  ;;  %v235_v19 = vld [vmem:[%s2518_s1 + $0x140] sm:$0xff] }
 0x7ed   :  { %v472_v6 = vpop.permute.xlu0 %471 }
 0x7ee   :  { %v474_v20 = vmul.f32 %v2054_v11, %v472_v6  ;;  %v236_v6 = vld [vmem:[%s2518_s1 + $0x148] sm:$0xff] }
 0x7f0   :  { %477 = vrot.lane.b32.xlu1 %v474_v20, %s2101_s7  ;;  %v2398_v20 = vpack.c.bf16 %v236_v6, %v235_v19 }
 0x862   :  { %v2347_v21 = vpop.permute.xlu1 %477 }
 0x863   :  { %1601 = vmatmul.mubr.msk.f32.vlgmr.msra.gmra.mrb[4].mxu1 %vm272_vm1, %v2347_v21 }
 0x864   :  { %1959 = vmatpush1.bf16.msra.mxu1 %v2288_v32  ;;  %751 = vmatprep.mubr.f32.mxu1 %v2099_v4 }
 0x865   :  { %1961 = vmatprep.subr.bf16.mxu1 %v2290_v33 }
 0x868   :  { %1963 = vmatpush1.bf16.msra.mxu1 %v2301_v36 }
 0x869   :  { %1973 = vmatprep.subr.bf16.mxu1 %v2277_v28 }
 0x936   :  { %v547_v22 = vpop.f32.mrb[4].mxu1 }
 0x937   :  { %v549_v23 = vpop.f32.mrb[5].mxu1 }
 0x938   :  { %v552_v24 = vsel %vm242_vm2, %v547_v22, %v549_v23  ;;  %v237_v22 = vld [vmem:[%s2518_s1 + $0x150] sm:$0xff]  ;;  %v238_v23 = vld [vmem:[%s2518_s1 + $0x158] sm:$0xff] }
 0x939   :  { %v553_v25 = vadd.f32 %v552_v24, %v2254_v3 }
 0x93b   :  { %2057 = vtanh.f32 %v553_v25  ;;  %v1602_v27 = vmul.f32 -1.442695, %v553_v25  ;;  %v2411_v25 = vpack.c.bf16 %v238_v23, %v237_v22 }
 0x93d   :  { %2059 = vpow2.f32 %v1602_v27 }
 0x945   :  { %v2058_v26 = vpop.eup %2057 }
 0x946   :  { %563 = vrot.lane.b32.xlu0 %v2058_v26, %s2100_s0 }
 0x947   :  { %v2060_v29 = vpop.eup %2059 }
 0x948   :  { %v557_v30 = vadd.f32 1.0, %v2060_v29 }
 0x94a   :  { %2061 = vrcp.f32 %v557_v30 }
 0x954   :  { %v2062_v31 = vpop.eup %2061 }
 0x955   :  { %v561_v28 = vmul.f32 %v2062_v31, %v468_v18 }
 0x9b8   :  { %v564_v34 = vpop.permute.xlu0 %563 }
 0x9b9   :  { %v566_v35 = vmul.f32 %v2062_v31, %v564_v34 }
 0x9bb   :  { %568 = vrot.lane.b32.xlu1 %v566_v35, %s2101_s7 }
 0xa2d   :  { %v569_v37 = vpop.permute.xlu1 %568 }
 0xa2e   :  { %v571_v38 = vadd.f32 %v569_v37, %v561_v28 }
 0xa30   :  { %2063 = vtanh.f32 %v571_v38 }
 0xa3a   :  { %v2064_v39 = vpop.eup %2063 }
 0xa3b   :  { %574 = vrot.lane.b32.xlu0 %v2064_v39, %s2100_s0 }
 0xaad   :  { %v575_v3 = vpop.permute.xlu0 %574 }
 0xaae   :  { %v577_v41 = vmul.f32 %v2062_v31, %v575_v3 }
 0xab0   :  { %580 = vrot.lane.b32.xlu1 %v577_v41, %s2101_s7 }
 0xb22   :  { %v2363_v43 = vpop.permute.xlu1 %580 }
 0xb23   :  { %1603 = vmatmul.mubr.msk.f32.vlgmr.msra.gmra.mrb[10].mxu0 %vm272_vm1, %v2363_v43 }
 0xb24   :  { %1967 = vmatpush1.bf16.msra.mxu0 %v2288_v32  ;;  %854 = vmatprep.mubr.f32.mxu0 %v2099_v4 }
 0xb25   :  { %1969 = vmatprep.subr.bf16.mxu0 %v2290_v33 }
 0xb28   :  { %1971 = vmatpush1.bf16.msra.mxu0 %v2301_v36 }
 0xb29   :  { %1980 = vmatprep.subr.bf16.mxu0 %v2097_v2 }
 0xbf6   :  { %v650_v44 = vpop.f32.mrb[10].mxu0 }
 0xbf7   :  { %v652_v45 = vpop.f32.mrb[11].mxu0 }
 0xbf8   :  { %v655_v46 = vsel %vm242_vm2, %v650_v44, %v652_v45 }
 0xbf9   :  { %v656_v47 = vadd.f32 %v655_v46, %v2260_v10 }
 0xbfb   :  { %2065 = vtanh.f32 %v656_v47  ;;  %v1604_v49 = vmul.f32 -1.442695, %v656_v47 }
 0xbfd   :  { %2067 = vpow2.f32 %v1604_v49 }
 0xc05   :  { %v2066_v48 = vpop.eup %2065 }
 0xc06   :  { %666 = vrot.lane.b32.xlu0 %v2066_v48, %s2100_s0 }
 0xc07   :  { %v2068_v50 = vpop.eup %2067 }
 0xc08   :  { %v660_v51 = vadd.f32 1.0, %v2068_v50 }
 0xc0a   :  { %2069 = vrcp.f32 %v660_v51 }
 0xc14   :  { %v2070_v52 = vpop.eup %2069 }
 0xc15   :  { %v664_v55 = vmul.f32 %v2070_v52, %v571_v38 }
 0xc78   :  { %v667_v53 = vpop.permute.xlu0 %666 }
 0xc79   :  { %v669_v54 = vmul.f32 %v2070_v52, %v667_v53 }
 0xc7b   :  { %671 = vrot.lane.b32.xlu1 %v669_v54, %s2101_s7 }
 0xced   :  { %v672_v56 = vpop.permute.xlu1 %671 }
 0xcee   :  { %v674_v57 = vadd.f32 %v672_v56, %v664_v55 }
 0xcf0   :  { %2071 = vtanh.f32 %v674_v57 }
 0xcfa   :  { %v2072_v58 = vpop.eup %2071 }
 0xcfb   :  { %677 = vrot.lane.b32.xlu0 %v2072_v58, %s2100_s0 }
 0xd6d   :  { %v678_v10 = vpop.permute.xlu0 %677 }
 0xd6e   :  { %v680_v59 = vmul.f32 %v2070_v52, %v678_v10 }
 0xd70   :  { %683 = vrot.lane.b32.xlu1 %v680_v59, %s2101_s7 }
 0xde2   :  { %v684_v61 = vpop.permute.xlu1 %683 }
 0xde3   :  { %1605 = vmatmul.mubr.msk.f32.vlgmr.msra.gmra.mrb[6].mxu1 %vm272_vm1, %v684_v61 }
 0xde4   :  { %1975 = vmatpush1.bf16.msra.mxu1 %v2288_v32  ;;  %957 = vmatprep.mubr.f32.mxu1 %v2099_v4 }
 0xde5   :  { %1977 = vmatprep.subr.bf16.mxu1 %v2290_v33 }
 0xde8   :  { %1979 = vmatpush1.bf16.msra.mxu1 %v2301_v36 }
 0xde9   :  { %1986 = vmatprep.subr.bf16.mxu1 %v2097_v2 }
 0xeb6   :  { %v753_v62 = vpop.f32.mrb[6].mxu1 }
 0xeb7   :  { %v755_v63 = vpop.f32.mrb[7].mxu1 }
 0xeb8   :  { %v758_v0 = vsel %vm242_vm2, %v753_v62, %v755_v63 }
 0xeb9   :  { %v759_v1 = vadd.f32 %v758_v0, %v2258_v8 }
 0xebb   :  { %2073 = vtanh.f32 %v759_v1  ;;  %v1606_v32 = vmul.f32 -1.442695, %v759_v1 }
 0xebd   :  { %2075 = vpow2.f32 %v1606_v32 }
 0xec5   :  { %v2074_v5 = vpop.eup %2073 }
 0xec6   :  { %769 = vrot.lane.b32.xlu0 %v2074_v5, %s2100_s0 }
 0xec7   :  { %v2076_v7 = vpop.eup %2075 }
 0xec8   :  { %v763_v9 = vadd.f32 1.0, %v2076_v7 }
 0xeca   :  { %2077 = vrcp.f32 %v763_v9  ;;  %v1612_v9 = vld [vmem:[%s2518_s1 + $0x160] ss:$0 sm:$0xff] }
 0xed4   :  { %v2078_v33 = vpop.eup %2077 }
 0xed5   :  { %v767_v13 = vmul.f32 %v2078_v33, %v674_v57 }
 0xf38   :  { %v770_v36 = vpop.permute.xlu0 %769 }
 0xf39   :  { %v772_v11 = vmul.f32 %v2078_v33, %v770_v36 }
 0xf3b   :  { %774 = vrot.lane.b32.xlu1 %v772_v11, %s2101_s7 }
 0xfad   :  { %v775_v14 = vpop.permute.xlu1 %774 }
 0xfae   :  { %v777_v16 = vadd.f32 %v775_v14, %v767_v13 }
 0xfb0   :  { %2079 = vtanh.f32 %v777_v16 }
 0xfba   :  { %v2080_v17 = vpop.eup %2079 }
 0xfbb   :  { %780 = vrot.lane.b32.xlu0 %v2080_v17, %s2100_s0 }
0x102d   :  { %v781_v8 = vpop.permute.xlu0 %780 }
0x102e   :  { %v783_v18 = vmul.f32 %v2078_v33, %v781_v8 }
0x1030   :  { %786 = vrot.lane.b32.xlu1 %v783_v18, %s2101_s7 }
0x10a2   :  { %v2406_v24 = vpop.permute.xlu1 %786 }
0x10a3   :  { %1607 = vmatmul.mubr.msk.f32.vlgmr.msra.gmra.mrb[12].mxu0 %vm272_vm1, %v2406_v24 }
0x10a4   :  { %1982 = vmatpush3.bf16.msra.mxu0 %v2398_v20  ;;  %1788 = vmatprep.mubr.msk.f32.mxu0 %vm2098_vm0, %v2099_v4 }
0x10a5   :  { %1983 = vmatprep.subr.bf16.mxu0 %v2097_v2 }
0x10a8   :  { %1985 = vmatpush3.bf16.msra.mxu0 %v2411_v25 }
0x10a9   :  { %1992 = vmatprep.subr.bf16.mxu0 %v2097_v2 }
0x10ab   :  { %1789 = vmatmul.mubr.msk.f32.vlgmr.msra.gmra.mrb[14].mxu0 %vm272_vm1, %v2312_v40 }
0x10ac   :  { %1994 = vmatpush3.bf16.msra.mxu0 %v2398_v20  ;;  %1810 = vmatprep.mubr.msk.f32.mxu0 %vm2098_vm0, %v2099_v4 }
0x10ad   :  { %1995 = vmatprep.subr.bf16.mxu0 %v2097_v2 }
0x10b0   :  { %1997 = vmatpush3.bf16.msra.mxu0 %v2411_v25 }
0x10b1   :  { %2004 = vmatprep.subr.bf16.mxu0 %v2097_v2 }
0x10b3   :  { %1811 = vmatmul.mubr.msk.f32.vlgmr.msra.gmra.mrb[16].mxu0 %vm272_vm1, %v2347_v21 }
0x10b4   :  { %2006 = vmatpush3.bf16.msra.mxu0 %v2398_v20  ;;  %1832 = vmatprep.mubr.msk.f32.mxu0 %vm2098_vm0, %v2099_v4 }
0x10b5   :  { %2007 = vmatprep.subr.bf16.mxu0 %v2097_v2 }
0x10b8   :  { %2009 = vmatpush3.bf16.msra.mxu0 %v2411_v25 }
0x10b9   :  { %2016 = vmatprep.subr.bf16.mxu0 %v2097_v2 }
0x10bb   :  { %1833 = vmatmul.mubr.msk.f32.vlgmr.msra.gmra.mrb[18].mxu0 %vm272_vm1, %v684_v61 }
0x10bc   :  { %2018 = vmatpush3.bf16.msra.mxu0 %v2398_v20  ;;  %1854 = vmatprep.mubr.msk.f32.mxu0 %vm2098_vm0, %v2099_v4 }
0x10bd   :  { %2019 = vmatprep.subr.bf16.mxu0 %v2097_v2 }
0x10c0   :  { %2021 = vmatpush3.bf16.msra.mxu0 %v2411_v25 }
0x1176   :  { %v856_v40 = vpop.f32.mrb[12].mxu0 }
0x1177   :  { %v858_v21 = vpop.f32.mrb[13].mxu0 }
0x1178   :  { %v861_v26 = vsel %vm242_vm2, %v856_v40, %v858_v21 }
0x1179   :  { %v862_v27 = vadd.f32 %v861_v26, %v2264_v15 }
0x117b   :  { %2081 = vtanh.f32 %v862_v27  ;;  %v1608_v38 = vmul.f32 -1.442695, %v862_v27 }
0x117d   :  { %2083 = vpow2.f32 %v1608_v38 }
0x117e   :  { %v2443_v29 = vpop.f32.mrb[14].mxu0 }
0x117f   :  { %v1790_v30 = vpop.f32.mrb[15].mxu0  ;;  %v1064_v14 = vadd.f32 %v1612_v9, %v2443_v29 }
0x1185   :  { %v2082_v31 = vpop.eup %2081 }
0x1186   :  { %v2445_v34 = vpop.f32.mrb[16].mxu0  ;;  %872 = vrot.lane.b32.xlu0 %v2082_v31, %s2100_s0 }
0x1187   :  { %v1812_v35 = vpop.f32.mrb[17].mxu0  ;;  %v2084_v39 = vpop.eup %2083  ;;  %v1206_v22 = vadd.f32 %v1612_v9, %v2445_v34 }
0x1188   :  { %v866_v3 = vadd.f32 1.0, %v2084_v39 }
0x118a   :  { %2085 = vrcp.f32 %v866_v3 }
0x118e   :  { %v2448_v28 = vpop.f32.mrb[18].mxu0 }
0x118f   :  { %v1834_v37 = vpop.f32.mrb[19].mxu0  ;;  %v1348_v18 = vadd.f32 %v1612_v9, %v2448_v28 }
0x1194   :  { %v2086_v41 = vpop.eup %2085 }
0x1195   :  { %v870_v45 = vmul.f32 %v2086_v41, %v777_v16 }
0x11f8   :  { %v873_v15 = vpop.permute.xlu0 %872 }
0x11f9   :  { %v875_v44 = vmul.f32 %v2086_v41, %v873_v15 }
0x11fb   :  { %877 = vrot.lane.b32.xlu1 %v875_v44, %s2101_s7 }
0x126d   :  { %v878_v46 = vpop.permute.xlu1 %877 }
0x126e   :  { %v880_v47 = vadd.f32 %v878_v46, %v870_v45 }
0x1270   :  { %2087 = vtanh.f32 %v880_v47 }
0x127a   :  { %v2088_v48 = vpop.eup %2087 }
0x127b   :  { %883 = vrot.lane.b32.xlu0 %v2088_v48, %s2100_s0 }
0x12ed   :  { %v884_v49 = vpop.permute.xlu0 %883 }
0x12ee   :  { %v886_v50 = vmul.f32 %v2086_v41, %v884_v49 }
0x12f0   :  { %889 = vrot.lane.b32.xlu1 %v886_v50, %s2101_s7 }
0x1362   :  { %v890_v51 = vpop.permute.xlu1 %889 }
0x1363   :  { %1609 = vmatmul.mubr.msk.f32.vlgmr.msra.gmra.mrb[8].mxu1 %vm272_vm1, %v890_v51  ;;  %1855 = vmatmul.mubr.msk.f32.vlgmr.msra.gmra.mrb[20].mxu0 %vm272_vm1, %v890_v51 }
0x1364   :  { %1988 = vmatpush3.bf16.msra.mxu1 %v2398_v20  ;;  %1799 = vmatprep.mubr.msk.f32.mxu1 %vm2098_vm0, %v2099_v4 }
0x1365   :  { %1989 = vmatprep.subr.bf16.mxu1 %v2097_v2 }
0x1368   :  { %1991 = vmatpush3.bf16.msra.mxu1 %v2411_v25 }
0x1369   :  { %1998 = vmatprep.subr.bf16.mxu1 %v2097_v2 }
0x136b   :  { %1800 = vmatmul.mubr.msk.f32.vlgmr.msra.gmra.mrb[10].mxu1 %vm272_vm1, %v2331_v60 }
0x136c   :  { %2000 = vmatpush3.bf16.msra.mxu1 %v2398_v20  ;;  %1821 = vmatprep.mubr.msk.f32.mxu1 %vm2098_vm0, %v2099_v4 }
0x136d   :  { %2001 = vmatprep.subr.bf16.mxu1 %v2097_v2 }
0x1370   :  { %2003 = vmatpush3.bf16.msra.mxu1 %v2411_v25 }
0x1371   :  { %2010 = vmatprep.subr.bf16.mxu1 %v2097_v2 }
0x1373   :  { %1822 = vmatmul.mubr.msk.f32.vlgmr.msra.gmra.mrb[12].mxu1 %vm272_vm1, %v2363_v43 }
0x1374   :  { %2012 = vmatpush3.bf16.msra.mxu1 %v2398_v20  ;;  %1843 = vmatprep.mubr.msk.f32.mxu1 %vm2098_vm0, %v2099_v4 }
0x1375   :  { %2013 = vmatprep.subr.bf16.mxu1 %v2097_v2 }
0x1378   :  { %2015 = vmatpush3.bf16.msra.mxu1 %v2411_v25 }
0x1379   :  { %2022 = vmatprep.subr.bf16.mxu1 %v2097_v2 }
0x137b   :  { %1844 = vmatmul.mubr.msk.f32.vlgmr.msra.gmra.mrb[14].mxu1 %vm272_vm1, %v2406_v24 }
0x137c   :  { %2024 = vmatpush3.bf16.msra.mxu1 %v2398_v20  ;;  %1865 = vmatprep.mubr.msk.f32.mxu1 %vm2098_vm0, %v2099_v4 }
0x137d   :  { %2025 = vmatprep.subr.bf16.mxu1 %v2097_v2 }
0x1380   :  { %2027 = vmatpush3.bf16.msra.mxu1 %v2411_v25 }
0x1436   :  { %v959_v60 = vpop.f32.mrb[8].mxu1  ;;  %v1486_v43 = vpop.f32.mrb[20].mxu0 }
0x1437   :  { %v961_v52 = vpop.f32.mrb[9].mxu1  ;;  %v1856_v53 = vpop.f32.mrb[21].mxu0  ;;  %v1490_v26 = vadd.f32 %v1612_v9, %v1486_v43 }
0x1438   :  { %v964_v54 = vsel %vm242_vm2, %v959_v60, %v961_v52 }
0x1439   :  { %v965_v55 = vadd.f32 %v964_v54, %v2262_v12 }
0x143b   :  { %2089 = vtanh.f32 %v965_v55  ;;  %v1610_v61 = vmul.f32 -1.442695, %v965_v55 }
0x143d   :  { %2091 = vpow2.f32 %v1610_v61 }
0x143e   :  { %v1131_v56 = vpop.f32.mrb[10].mxu1 }
0x143f   :  { %v1801_v57 = vpop.f32.mrb[11].mxu1  ;;  %v1135_v33 = vadd.f32 %v1612_v9, %v1131_v56 }
0x1445   :  { %v2090_v58 = vpop.eup %2089 }
0x1446   :  { %v1273_v10 = vpop.f32.mrb[12].mxu1  ;;  %975 = vrot.lane.b32.xlu0 %v2090_v58, %s2100_s0 }
0x1447   :  { %v1823_v4 = vpop.f32.mrb[13].mxu1  ;;  %v2092_v62 = vpop.eup %2091  ;;  %v1277_v17 = vadd.f32 %v1612_v9, %v1273_v10 }
0x1448   :  { %v969_v63 = vadd.f32 1.0, %v2092_v62 }
0x144a   :  { %2093 = vrcp.f32 %v969_v63 }
0x144e   :  { %v1415_v2 = vpop.f32.mrb[14].mxu1 }
0x144f   :  { %v1845_v59 = vpop.f32.mrb[15].mxu1  ;;  %v1419_v36 = vadd.f32 %v1612_v9, %v1415_v2 }
0x1454   :  { %v2094_v0 = vpop.eup %2093 }
0x1455   :  { %v973_v12 = vmul.f32 %v2094_v0, %v880_v47 }
0x14b8   :  { %v976_v42 = vpop.permute.xlu0 %975 }
0x14b9   :  { %v978_v1 = vmul.f32 %v2094_v0, %v976_v42 }
0x14bb   :  { %980 = vrot.lane.b32.xlu1 %v978_v1, %s2101_s7 }
0x152d   :  { %v981_v5 = vpop.permute.xlu1 %980 }
0x152e   :  { %v983_v32 = vadd.f32 %v981_v5, %v973_v12 }
0x1530   :  { %2095 = vtanh.f32 %v983_v32 }
0x153a   :  { %v2096_v7 = vpop.eup %2095 }
0x153b   :  { %986 = vrot.lane.b32.xlu0 %v2096_v7, %s2100_s0 }
0x153f   :  { %1568 = vrot.lane.b32.xlu0 %v1135_v33, %s2100_s0 }
0x1543   :  { %1576 = vrot.lane.b32.xlu0 %v1419_v36, %s2100_s0 }
0x15ad   :  { %v987_v11 = vpop.permute.xlu0 %986 }
0x15ae   :  { %v989_v13 = vmul.f32 %v2094_v0, %v987_v11 }
0x15b0   :  { %1492 = vrot.lane.b32.xlu1 %v989_v13, %s2101_s7 }
0x15b1   :  { %v1569_v16 = vpop.permute.xlu0 %1568 }
0x15b2   :  { %v1584_v8 = vsel %vm1583_vm3, %v1064_v14, %v1569_v16 }
0x15b3   :  { %1588 = vst [vmem:[%s2520_s2] sm:$0x3f] %v1584_v8 }
0x15b4   :  { %1572 = vrot.lane.b32.xlu1 %v1277_v17, %s2100_s0 }
0x15b5   :  { %v1577_v19 = vpop.permute.xlu0 %1576 }
0x15b6   :  { %v1586_v6 = vsel %vm1583_vm3, %v1348_v18, %v1577_v19 }
0x15b7   :  { %1590 = vst [vmem:[%s2520_s2 + $0x10] sm:$0x3f] %v1586_v6 }
0x1622   :  { %v1493_v20 = vpop.permute.xlu1 %1492 }
0x1623   :  { %1866 = vmatmul.mubr.msk.f32.vlgmr.msra.gmra.mrb[16].mxu1 %vm272_vm1, %v1493_v20 }
0x1626   :  { %v1573_v23 = vpop.permute.xlu1 %1572 }
0x1627   :  { %v1585_v24 = vsel %vm1583_vm3, %v1206_v22, %v1573_v23 }
0x1628   :  { %1589 = vst [vmem:[%s2520_s2 + $0x8] sm:$0x3f] %v1585_v24 }
0x16f6   :  { %v1562_v25 = vpop.f32.mrb[16].mxu1 }
0x16f7   :  { %v1566_v40 = vadd.f32 %v1612_v9, %v1562_v25  ;;  %v1867_v21 = vpop.f32.mrb[17].mxu1 }
0x16f9   :  { %1580 = vrot.lane.b32.xlu1 %v1566_v40, %s2100_s0 }
0x176b   :  { %v1581_v27 = vpop.permute.xlu1 %1580 }
0x176c   :  { %v1587_v29 = vsel %vm1583_vm3, %v1490_v26, %v1581_v27 }
0x176d   :  { %1591 = vst [vmem:[%s2520_s2 + $0x18] sm:$0x3f] %v1587_v29 }

</bundles_post_ra>
